<compile_context>
chip_gen: v5e
topology: v5e:2x2
jax: 0.10.0
libtpu: 0.0.40
codegen_flags: <defaults>
</compile_context>

<pallas_src>
import functools
import math

import jax
import jax.numpy as jnp
from jax.experimental import pallas as pl
from jax.experimental.pallas import tpu as pltpu


def _mil_attention_kernel(x_ref, w_ref, b_ref, ww_ref, bw_ref, out_ref, *,
                          d_pad: int, use_gated: bool):
    # x: (N, F) in its native dtype; MXU accumulates in f32.
    x = x_ref[...]

    # Fused projection: (N, F) @ (F, d_pad [gated: 2*d_pad]) + bias.
    h_all = (jnp.dot(x, w_ref[...], preferred_element_type=jnp.float32)
             + b_ref[...])

    h = jnp.tanh(h_all[:, :d_pad])                       # v branch
    if use_gated:
        h = h * jax.nn.sigmoid(h_all[:, d_pad:])         # gate branch

    # Lane-dense attention scores: (1, d_pad) @ (d_pad, N) -> (1, N).
    s = jnp.dot(ww_ref[...], h.T, preferred_element_type=jnp.float32)
    s = s + bw_ref[0]                                    # scalar bias from SMEM

    # Softmax over the instance axis (now the lane axis).
    m = jnp.max(s, axis=-1, keepdims=True)
    e = jnp.exp(s - m)
    denom = jnp.sum(e, axis=-1, keepdims=True)
    # Exact divide (NOT approx reciprocal) — the normalization accuracy sets
    # the overall result accuracy and the op is a single tiny VPU divide.
    out_ref[...] = (e / denom).astype(out_ref.dtype)


def _pad_last(a, target):
    pad = target - a.shape[-1]
    if pad == 0:
        return a
    cfg = [(0, 0)] * (a.ndim - 1) + [(0, pad)]
    return jnp.pad(a, cfg)


def mil_attention(x, wv, bv, ww, bw, wu=None, bu=None, *, use_gated: bool = False):
    """Forward pass of MILAttentionLayer as one Pallas kernel.

    Args:
      x:  (N, F) instances.
      wv: (F, D), bv: (1, D)   — v_weight (pre-transposed Linear weight).
      ww: (D, 1), bw: (1, 1)   — w_weight.
      wu: (F, D), bu: (1, D)   — u_weight (only if use_gated).
    Returns:
      alpha: (N, 1) softmax attention weights (softmax over instances).
    """
    n, f = x.shape
    d = wv.shape[1]
    assert wv.shape == (f, d) and bv.shape == (1, d)
    assert ww.shape == (d, 1) and bw.shape == (1, 1)
    if use_gated:
        assert wu is not None and bu is not None
        assert wu.shape == (f, d) and bu.shape == (1, d)

    # Pad hidden dim up to a lane multiple so the tanh/sigmoid halves split on
    # a 128-lane boundary and the h.T transpose is lane-aligned.
    d_pad = ((d + 127) // 128) * 128

    wv_p, bv_p = _pad_last(wv, d_pad), _pad_last(bv, d_pad)
    if use_gated:
        wu_p, bu_p = _pad_last(wu, d_pad), _pad_last(bu, d_pad)
        w_fused = jnp.concatenate([wv_p, wu_p], axis=1)      # (F, 2*Dp)
        b_fused = jnp.concatenate([bv_p, bu_p], axis=1)      # (1, 2*Dp)
    else:
        w_fused, b_fused = wv_p, bv_p                        # (F, Dp), (1, Dp)

    ww_row = _pad_last(ww.T, d_pad)                          # (1, Dp), zero-padded
    bw_vec = bw.reshape(1).astype(jnp.float32)               # (1,) scalar in SMEM

    kernel = functools.partial(_mil_attention_kernel,
                               d_pad=d_pad, use_gated=use_gated)

    alpha_row = pl.pallas_call(
        kernel,
        out_shape=jax.ShapeDtypeStruct((1, n), jnp.float32),
        in_specs=[
            pl.BlockSpec(memory_space=pltpu.MemorySpace.VMEM),   # x
            pl.BlockSpec(memory_space=pltpu.MemorySpace.VMEM),   # fused W
            pl.BlockSpec(memory_space=pltpu.MemorySpace.VMEM),   # fused bias
            pl.BlockSpec(memory_space=pltpu.MemorySpace.VMEM),   # ww row
            pl.BlockSpec(memory_space=pltpu.MemorySpace.SMEM),   # bw scalar
        ],
        out_specs=pl.BlockSpec(memory_space=pltpu.MemorySpace.VMEM),
    )(x, w_fused, b_fused, ww_row, bw_vec)

    # (1, N) row -> (N, 1) column (same flat order), matching F.softmax(s, dim=0).
    return alpha_row.reshape(n, 1)


def _reference(x, wv, bv, ww, bw, wu=None, bu=None, *, use_gated: bool = False):
    h = jnp.tanh(x @ wv + bv)
    if use_gated:
        h = h * jax.nn.sigmoid(x @ wu + bu)
    s = h @ ww + bw
    return jax.nn.softmax(s, axis=0)


if __name__ == "__main__":
    # Small shapes consistent with the module: a bag of N instances,
    # input_dim features, weight_params_dim hidden size.
    N, INPUT_DIM, WEIGHT_DIM = 8, 32, 16

    key = jax.random.PRNGKey(0)
    k_x, k_wv, k_bv, k_wu, k_bu, k_ww, k_bw = jax.random.split(key, 7)

    x = jax.random.normal(k_x, (N, INPUT_DIM), dtype=jnp.float32)

    def linear_init(kw, kb, fan_in, fan_out):
        bound = 1.0 / math.sqrt(fan_in)
        w = jax.random.uniform(kw, (fan_in, fan_out), minval=-bound, maxval=bound,
                               dtype=jnp.float32)
        b = jax.random.uniform(kb, (1, fan_out), minval=-bound, maxval=bound,
                               dtype=jnp.float32)
        return w, b

    wv, bv = linear_init(k_wv, k_bv, INPUT_DIM, WEIGHT_DIM)
    wu, bu = linear_init(k_wu, k_bu, INPUT_DIM, WEIGHT_DIM)
    ww, bw = linear_init(k_ww, k_bw, WEIGHT_DIM, 1)

    for gated in (True, False):
        alpha = mil_attention(x, wv, bv, ww, bw, wu, bu, use_gated=gated)
        alpha = jax.block_until_ready(alpha)
        ref = _reference(x, wv, bv, ww, bw, wu, bu, use_gated=gated)

        assert alpha.shape == (N, 1)
        assert jnp.allclose(alpha, ref, atol=1e-4, rtol=1e-3), (
            f"mismatch (gated={gated}): {alpha.ravel()} vs {ref.ravel()}")
        assert jnp.allclose(jnp.sum(alpha), 1.0, atol=1e-3)

    print("KERNEL_OK")
</pallas_src>

<mosaic_0001>
module attributes {stable_mosaic.version = 11 : i64} {
  func.func @_mil_attention_kernel(%arg0: memref<8x32xf32, #tpu.memory_space<vmem>>, %arg1: memref<32x256xf32, #tpu.memory_space<vmem>>, %arg2: memref<1x256xf32, #tpu.memory_space<vmem>>, %arg3: memref<1x128xf32, #tpu.memory_space<vmem>>, %arg4: memref<1xf32, #tpu.memory_space<smem>>, %arg5: memref<1x8xf32, #tpu.memory_space<vmem>>) attributes {dimension_semantics = [], scalar_prefetch = 0 : i64, scratch_operands = 0 : i64, tpu.core_type = #tpu.core_type<tc>} {
    %c0 = arith.constant 0 : index
    %c0_0 = arith.constant 0 : index
    %0 = vector.load %arg0[%c0, %c0_0] : memref<8x32xf32, #tpu.memory_space<vmem>>, vector<8x32xf32>
    %c0_1 = arith.constant 0 : index
    %c0_2 = arith.constant 0 : index
    %1 = vector.load %arg1[%c0_1, %c0_2] : memref<32x256xf32, #tpu.memory_space<vmem>>, vector<32x256xf32>
    %cst = arith.constant dense<0.000000e+00> : vector<8x256xf32>
    %2 = tpu.matmul %0, %1, %cst {dimension_numbers = #tpu.dot_dimension_numbers<[1], [0], [0], [1], [0, 0, 1, 1], [], []>} : vector<8x32xf32>, vector<32x256xf32>, vector<8x256xf32> -> vector<8x256xf32>
    %c0_3 = arith.constant 0 : index
    %c0_4 = arith.constant 0 : index
    %3 = vector.load %arg2[%c0_3, %c0_4] : memref<1x256xf32, #tpu.memory_space<vmem>>, vector<1x256xf32>
    %4 = vector.broadcast %3 : vector<1x256xf32> to vector<8x256xf32>
    %5 = arith.addf %2, %4 : vector<8x256xf32>
    %6 = vector.extract_strided_slice %5 {offsets = [0, 0], sizes = [8, 128], strides = [1, 1]} : vector<8x256xf32> to vector<8x128xf32>
    %7 = math.tanh %6 : vector<8x128xf32>
    %8 = vector.extract_strided_slice %5 {offsets = [0, 128], sizes = [8, 128], strides = [1, 1]} : vector<8x256xf32> to vector<8x128xf32>
    %9 = arith.negf %8 : vector<8x128xf32>
    %10 = math.exp %9 : vector<8x128xf32>
    %cst_5 = arith.constant 1.000000e+00 : f32
    %11 = vector.broadcast %cst_5 : f32 to vector<8x128xf32>
    %12 = arith.addf %11, %10 : vector<8x128xf32>
    %13 = arith.divf %11, %12 : vector<8x128xf32>
    %14 = arith.mulf %7, %13 : vector<8x128xf32>
    %c0_6 = arith.constant 0 : index
    %c0_7 = arith.constant 0 : index
    %15 = vector.load %arg3[%c0_6, %c0_7] : memref<1x128xf32, #tpu.memory_space<vmem>>, vector<1x128xf32>
    %16 = tpu.transpose %14, [1, 0] : vector<8x128xf32> -> vector<128x8xf32>
    %cst_8 = arith.constant dense<0.000000e+00> : vector<1x8xf32>
    %17 = tpu.matmul %15, %16, %cst_8 {dimension_numbers = #tpu.dot_dimension_numbers<[1], [0], [0], [1], [0, 0, 1, 1], [], []>} : vector<1x128xf32>, vector<128x8xf32>, vector<1x8xf32> -> vector<1x8xf32>
    %c0_9 = arith.constant 0 : index
    %18 = memref.load %arg4[%c0_9] : memref<1xf32, #tpu.memory_space<smem>>
    %19 = vector.broadcast %18 : f32 to vector<1x8xf32>
    %20 = arith.addf %17, %19 : vector<1x8xf32>
    %cst_10 = arith.constant dense<0xFF800000> : vector<1xf32>
    %21 = vector.multi_reduction <maximumf>, %20, %cst_10 [1] : vector<1x8xf32> to vector<1xf32>
    %22 = vector.shape_cast %21 : vector<1xf32> to vector<1x1xf32>
    %23 = vector.broadcast %22 : vector<1x1xf32> to vector<1x8xf32>
    %24 = arith.subf %20, %23 : vector<1x8xf32>
    %25 = math.exp %24 : vector<1x8xf32>
    %cst_11 = arith.constant dense<0.000000e+00> : vector<1xf32>
    %26 = vector.multi_reduction <add>, %25, %cst_11 [1] : vector<1x8xf32> to vector<1xf32>
    %27 = vector.shape_cast %26 : vector<1xf32> to vector<1x1xf32>
    %28 = vector.broadcast %27 : vector<1x1xf32> to vector<1x8xf32>
    %29 = arith.divf %25, %28 : vector<1x8xf32>
    %c0_12 = arith.constant 0 : index
    %c0_13 = arith.constant 0 : index
    %30 = vector.load %arg5[%c0_12, %c0_13] : memref<1x8xf32, #tpu.memory_space<vmem>>, vector<1x8xf32>
    tpu.vector_store %arg5[%c0_12, %c0_13], %29 {strides = array<i32>} : memref<1x8xf32, #tpu.memory_space<vmem>>, vector<1x8xf32>,
    return
  }
}

</mosaic_0001>

<bundles_post_ra>
// kernel: tpu_custom_call.1
= control target key start
LH: loop header
LB: loop body
LE: loop exit
PB: predicated region body
PF: predicated region fallthrough
CT: control target
= control target key end

     0   :  { %11 = vsyncpa [#allocation4], 0  ;;  %s351_s0 = inlined_call_operand.hbm [shape: f32[8,32], index: 0, kind: input, shape index: {}]   ;;  %s352_s1 = inlined_call_operand.hbm [shape: f32[32,256], index: 1, kind: input, shape index: {}]   ;;  %s353_s2 = inlined_call_operand.vmem [shape: f32[1,256], index: 2, kind: input, shape index: {}]   ;;  %s354_s3 = inlined_call_operand.vmem [shape: f32[1,128], index: 3, kind: input, shape index: {}]   ;;  %s355_s4 = inlined_call_operand.<no memory space> [shape: f32[1], index: 4, kind: input, shape index: {}]   ;;  %s356_s5 = inlined_call_operand.hbm [shape: f32[1,8], index: 5, kind: output, shape index: {}]  }
   0x1   :  { %12 = vsyncpa [#allocation7], 0 }
   0x2   :  { %13 = vsyncpa [#allocation5], 0  ;;  %s19_s20 = sshll.u32 %s351_s0, 4  ;;  %s295_s21 = smov [#allocation3]   ;;  %s20_s20 = int_to_ptr.hbm [resolvable:$true] %s19_s20 }
   0x3   :  { %s21_s22 = sshll.u32 %s295_s21, 4  ;;  %s29_s25 = sshll.u32 %s352_s1, 4  ;;  %s22_s22 = int_to_ptr.vmem [resolvable:$true] %s21_s22  ;;  %s30_s25 = int_to_ptr.hbm [resolvable:$true] %s29_s25 }
   0x4   :  { %24 = dma.hbm_to_vmem [thread:$0]  %s20_s20, 128, %s22_s22, [#allocation4]  }
   0x5   :  { %s296_s26 = smov [#allocation6]   ;;  %s297_s28 = smov 256  }
   0x6   :  { %s31_s27 = sshll.u32 %s296_s26, 4  ;;  %s298_s29 = smov 16   ;;  %s32_s27 = int_to_ptr.vmem [resolvable:$true] %s31_s27 }
   0x7   :  { %37 = dma.hbm_to_vmem [thread:$0]  %s30_s25, 1024, %s32_s27, [#allocation7], %s297_s28, %s297_s28, %s298_s29  }
   0x8   :  { %289 = dma.done.wait [#allocation4], 128  }
   0x9   :  { %290 = vsyncadd [#allocation4], 4294967168 }
   0xa   :  { %291 = dma.done.wait [#allocation7], 1024  }
   0xb   :  { %292 = vsyncadd [#allocation7], 4294966272  ;;  %v60_v0 = vld [vmem:[#allocation6 + $0x38] sm:$0xff]  ;;  %v58_v1 = vld [vmem:[#allocation6 + $0x28] sm:$0xff]  ;;  %vm67_vm0 = vcmask 261120   ;;  %v134_v32 = vstv %s355_s4  ;;  %vm155_vm5 = vcmask 57344  }
   0xc   :  { %103 = vmatpush.msra.mxu1 %v60_v0  ;;  %v59_v2 = vld [vmem:[#allocation6 + $0x30] sm:$0xff]  ;;  %v56_v3 = vld [vmem:[#allocation6 + $0x18] sm:$0xff]  ;;  %v57_v4 = vld [vmem:[#allocation6 + $0x20] sm:$0xff]  ;;  %s188_s10 = sshll.u32 %s356_s5, 4  ;;  %s189_s10 = int_to_ptr.hbm [resolvable:$true] %s188_s10 }
   0xd   :  { %83 = vmatpush.msra.mxu0 %v59_v2  ;;  %v55_v5 = vld [vmem:[#allocation6 + $0x10] sm:$0xff]  ;;  %v54_v6 = vld [vmem:[#allocation6 + $0x8] sm:$0xff]  ;;  %v52_v7 = vld [vmem:[#allocation3] sm:$0xff] }
   0xe   :  { %104 = vmatpush.msra.mxu1 %v58_v1  ;;  %v53_v8 = vld [vmem:[#allocation6] sm:$0xff]  ;;  %v61_v9 = vld [vmem:[%s353_s2] sm:$0x3] }
   0xf   :  { %84 = vmatpush.msra.mxu0 %v57_v4  ;;  %v64_v10 = vperm.slane %v61_v9, 1  ;;  %v63_v16 = vperm.slane %v61_v9, 0  ;;  %v132_v31 = vld [vmem:[%s354_s3] sm:$0x1]  ;;  %s299_s3 = smov [#allocation8]  }
  0x10   :  { %105 = vmatpush.msra.mxu1 %v56_v3  ;;  %s186_s4 = sshll.u32 %s299_s3, 4  ;;  %s187_s4 = int_to_ptr.vmem [resolvable:$true] %s186_s4 }
  0x11   :  { %85 = vmatpush.msra.mxu0 %v55_v5 }
  0x12   :  { %106 = vmatpush.msra.mxu1 %v54_v6 }
  0x13   :  { %200 = vmatmul.msk.f32.vlgmr.msra.gmra.mxu1 %vm67_vm0, %v52_v7  ;;  %86 = vmatpush.msra.mxu0 %v53_v8 }
  0x14   :  { %199 = vmatmul.msk.f32.vlgmr.msra.gmra.mxu0 %vm67_vm0, %v52_v7 }
  0x90   :  { %v108_v11 = vpop.f32.mrf.mxu1 }
  0x91   :  { %v109_v12 = vadd.f32 %v108_v11, %v64_v10  ;;  %v88_v17 = vpop.f32.mrf.mxu0 }
  0x92   :  { %v89_v18 = vadd.f32 %v88_v17, %v63_v16 }
  0x93   :  { %v201_v13 = vmul.f32 -1.442695, %v109_v12 }
  0x95   :  { %207 = vpow2.f32 %v201_v13 }
  0x9b   :  { %v208_v14 = vpop.eup %207 }
  0x9c   :  { %v115_v15 = vadd.f32 1.0, %v208_v14 }
  0x9e   :  { %209 = vrcp.f32 %v115_v15  ;;  %v127_v22 = vand.u32 2147483648, %v115_v15  ;;  %v125_v24 = vand.u32 2147483647, %v115_v15  ;;  %vm121_vm2 = vweird.f32 %v115_v15 }
  0x9f   :  { %211 = vtanh.f32 %v89_v18 }
  0xa0   :  { %v128_v27 = vor.u32 1.1754944e-38, %v127_v22  ;;  %vm126_vm4 = vcmp.eq.f32.partialorder %v125_v24, 8.507059e+37 }
  0xa4   :  { %v210_v19 = vpop.eup %209 }
  0xa5   :  { %v117_v20 = vmul.f32 %v210_v19, %v115_v15  ;;  %vm122_vm1 = vweird.f32 %v210_v19  ;;  %v212_v26 = vpop.eup %211 }
  0xa6   :  { %vm123_vm3 = vmor %vm121_vm2, %vm122_vm1 }
  0xa7   :  { %v118_v21 = vsub.f32 1.0, %v117_v20 }
  0xa9   :  { %v119_v23 = vmul.f32 %v210_v19, %v118_v21 }
  0xab   :  { %v120_v25 = vadd.f32 %v210_v19, %v119_v23 }
  0xad   :  { %v124_v28 = vsel %vm123_vm3, %v210_v19, %v120_v25 }
  0xae   :  { %v129_v29 = vsel %vm126_vm4, %v128_v27, %v124_v28 }
  0xaf   :  { %v131_v30 = vmul.f32 %v212_v26, %v129_v29 }
  0xb1   :  { %150 = vmatpush.xpose.msra.mxu2 %v131_v30 }
  0xb4   :  { %151 = vmatmul.f32.vlgmr.msra.gmra.mxu2 %v132_v31 }
 0x137   :  { %v152_v33 = vpop.f32.mrf.mxu2 }
 0x138   :  { %v153_v34 = vadd.f32 %v152_v33, %v134_v32 }
 0x13a   :  { %v156_v35 = vsel %vm155_vm5, %v153_v34, -inf }
 0x13b   :  { %157 = vmax.xlane.f32.xlu0 %v156_v35 }
 0x1ae   :  { %v158_v36 = vpop.xlane.xlu0 %157 }
 0x1af   :  { %v159_v37 = vsub.f32 %v153_v34, %v158_v36 }
 0x1b1   :  { %v160_v38 = vmul.f32 1.442695, %v159_v37 }
 0x1b3   :  { %213 = vpow2.f32 %v160_v38 }
 0x1b9   :  { %v214_v39 = vpop.eup %213 }
 0x1ba   :  { %v162_v40 = vsel %vm155_vm5, %v214_v39, 0.0 }
 0x1bb   :  { %163 = vadd.xlane.f32.xlu0 %v162_v40 }
 0x22e   :  { %v164_v41 = vpop.xlane.xlu0 %163 }
 0x22f   :  { %215 = vrcp.f32 %v164_v41  ;;  %v176_v45 = vand.u32 2147483648, %v164_v41  ;;  %v174_v47 = vand.u32 2147483647, %v164_v41  ;;  %vm170_vm7 = vweird.f32 %v164_v41 }
 0x231   :  { %v177_v49 = vor.u32 1.1754944e-38, %v176_v45  ;;  %vm175_vm9 = vcmp.eq.f32.partialorder %v174_v47, 8.507059e+37 }
 0x235   :  { %v216_v42 = vpop.eup %215 }
 0x236   :  { %v166_v43 = vmul.f32 %v216_v42, %v164_v41  ;;  %vm171_vm6 = vweird.f32 %v216_v42 }
 0x237   :  { %vm172_vm8 = vmor %vm170_vm7, %vm171_vm6 }
 0x238   :  { %v167_v44 = vsub.f32 1.0, %v166_v43 }
 0x23a   :  { %v168_v46 = vmul.f32 %v216_v42, %v167_v44 }
 0x23c   :  { %v169_v48 = vadd.f32 %v216_v42, %v168_v46 }
 0x23e   :  { %v173_v50 = vsel %vm172_vm8, %v216_v42, %v169_v48 }
 0x23f   :  { %v178_v51 = vsel %vm175_vm9, %v177_v49, %v173_v50 }
 0x240   :  { %v179_v52 = vmul.f32 %v214_v39, %v178_v51 }
 0x242   :  { %180 = vst.msk [vmem:[#allocation8] sm:$0x1] %vm155_vm5, %v179_v52 }
 0x243   :  { %191 = dma.vmem_to_hbm [thread:$0]  %s187_s4, 16, %s189_s10, [#allocation5]  }
 0x244   :  { %293 = dma.done.wait [#allocation5], 16  }
 0x245   :  { %294 = vsyncadd [#allocation5], 4294967280 }
 0x246   :  { %196 = vsyncpa [#allocation4], 1 }
 0x247   :  { %197 = vsyncpa [#allocation7], 1 }
 0x248   :  { %198 = vsyncpa [#allocation5], 1 }

</bundles_post_ra>
